<compile_context>
chip_gen: v7x
topology: tpu7x:2x2x1
jax: 0.10.0
libtpu: 0.0.40
codegen_flags: <defaults>
</compile_context>

<pallas_src>
import numpy as np
import jax
import jax.numpy as jnp
from jax.experimental import pallas as pl
from jax.experimental.pallas import tpu as pltpu

# ----- deterministic SRM filter bank (identical to the PyTorch __init__) -----
_q = [4.0, 12.0, 2.0]
_f1 = np.asarray([[0, 0, 0, 0, 0],
                  [0, -1, 2, -1, 0],
                  [0, 2, -4, 2, 0],
                  [0, -1, 2, -1, 0],
                  [0, 0, 0, 0, 0]], dtype=np.float64) / _q[0]
_f2 = np.asarray([[-1, 2, -2, 2, -1],
                  [2, -6, 8, -6, 2],
                  [-2, 8, -12, 8, -2],
                  [2, -6, 8, -6, 2],
                  [-1, 2, -2, 2, -1]], dtype=np.float64) / _q[1]
_f3 = np.asarray([[0, 0, 0, 0, 0],
                  [0, 0, 0, 0, 0],
                  [0, 1, -2, 1, 0],
                  [0, 0, 0, 0, 0],
                  [0, 0, 0, 0, 0]], dtype=np.float64) / _q[2]
SRM_FILTERS = np.stack([_f1, _f2, _f3]).astype(np.float32)   # [3, 5, 5]

# The module sums the three filter responses and all three hit the same 5x5 taps
# -> equivalent to one combined 5x5 filter (FP accumulation order differs
# slightly from the per-filter PyTorch sum; covered by 1e-4 tolerance).
COMBINED_FILTER = SRM_FILTERS.sum(axis=0).astype(np.float32)  # [5, 5]

# The combined filter is symmetric under row and column reflection; the kernel
# relies on this to reuse row sums and column partials.
assert np.allclose(COMBINED_FILTER, COMBINED_FILTER[::-1, :])
assert np.allclose(COMBINED_FILTER, COMBINED_FILTER[:, ::-1])

_RO = 8     # sublane-aligned row offset of the strip inside the padded scratch
_SUB = 8    # sub-strip height for register-resident accumulation


def _make_srm_kernel(S, TH, W, C):
    """Build the kernel for S strips of TH rows, width W, C input channels."""
    sub = _SUB if TH % _SUB == 0 else TH
    nsub = TH // sub

    w = COMBINED_FILTER
    w00, w10, w20 = float(w[0, 0]), float(w[1, 0]), float(w[2, 0])
    w01, w11, w21 = float(w[0, 1]), float(w[1, 1]), float(w[2, 1])
    w02, w12, w22 = float(w[0, 2]), float(w[1, 2]), float(w[2, 2])

    def body(x_ref, top_ref, bot_ref, out_ref, pad_ref):
        # ---- stage the strip + 2-row halos into the row-padded scratch -------
        # (only the halo bands are zeroed/written; no full scratch zero fill)
        pad_ref[:, _RO:_RO + TH, :] = x_ref[...]

        if S == 1:
            pad_ref[:, _RO - 2:_RO, :] = jnp.zeros((C, 2, W), jnp.float32)
            pad_ref[:, _RO + TH:_RO + TH + 2, :] = jnp.zeros((C, 2, W), jnp.float32)
        else:
            s = pl.program_id(1)

            @pl.when(s == 0)
            def _():
                pad_ref[:, _RO - 2:_RO, :] = jnp.zeros((C, 2, W), jnp.float32)

            @pl.when(s > 0)
            def _():
                pad_ref[:, _RO - 2:_RO, :] = top_ref[:, 6:8, :]

            @pl.when(s == S - 1)
            def _():
                pad_ref[:, _RO + TH:_RO + TH + 2, :] = jnp.zeros((C, 2, W), jnp.float32)

            @pl.when(s < S - 1)
            def _():
                pad_ref[:, _RO + TH:_RO + TH + 2, :] = bot_ref[:, 0:2, :]

        # ---- hoisted column-border masks (the rolls below wrap circularly) ---
        col = jax.lax.broadcasted_iota(jnp.int32, (C, sub, W), 2)
        ok_m2 = col >= 2
        ok_m1 = col >= 1
        ok_p1 = col < W - 1
        ok_p2 = col < W - 2

        # ---- 5x5 SRM cross-correlation, register-resident per sub-strip ------
        for t in range(nsub):
            r = t * sub
            base = _RO + r - 2
            rows = [pad_ref[:, base + i:base + i + sub, :] for i in range(5)]
            # row symmetry: w[0,j] == w[4,j], w[1,j] == w[3,j]
            r04 = rows[0] + rows[4]
            r13 = rows[1] + rows[3]
            r2c = rows[2]
            # column partials (column symmetry: partial_3 == partial_1, _4 == _0)
            p0 = w00 * r04 + w10 * r13 + w20 * r2c
            p1 = w01 * r04 + w11 * r13 + w21 * r2c
            p2 = w02 * r04 + w12 * r13 + w22 * r2c
            # acc[c] = p0[c-2] + p1[c-1] + p2[c] + p1[c+1] + p0[c+2]
            acc = p2
            acc = acc + jnp.where(ok_m2, pltpu.roll(p0, 2 % W, axis=2), 0.0)
            acc = acc + jnp.where(ok_p2, pltpu.roll(p0, (-2) % W, axis=2), 0.0)
            acc = acc + jnp.where(ok_m1, pltpu.roll(p1, 1 % W, axis=2), 0.0)
            acc = acc + jnp.where(ok_p1, pltpu.roll(p1, (-1) % W, axis=2), 0.0)

            out_ref[0:C, r:r + sub, :] = acc          # SRM maps (channels 0..C-1)
            out_ref[C:2 * C, r:r + sub, :] = r2c      # input passthrough (C..2C-1)

    if S == 1:
        def kernel(x_ref, out_ref, pad_ref):
            body(x_ref, None, None, out_ref, pad_ref)
    else:
        def kernel(x_ref, top_ref, bot_ref, out_ref, pad_ref):
            body(x_ref, top_ref, bot_ref, out_ref, pad_ref)
    return kernel


def _vmem_capacity_bytes():
    try:
        info = pltpu.get_tpu_info()
        cap = getattr(info, "vmem_capacity_bytes", None)
        if cap:
            return int(cap)
    except Exception:
        pass
    return 64 << 20   # conservative fallback (v7x per-core VMEM)


def _estimate_vmem_bytes(C, th, W):
    f32 = 4
    in_strip = C * th * W * f32
    halo = C * 8 * W * f32
    out_strip = 2 * C * th * W * f32
    scratch = C * (th + 16) * W * f32
    # inputs/outputs are double-buffered by the pipeline; scratch is not.
    return 2 * (in_strip + 2 * halo + out_strip) + scratch


def _pick_strip_height(H, W, C, budget):
    # largest strip height (<=128, multiple of 8 unless it is H itself) that
    # divides H and fits the VMEM budget; fall back to the smallest divisor.
    cands = [t for t in range(min(H, 128), 7, -1)
             if H % t == 0 and (t % 8 == 0 or t == H)]
    if not cands:
        return H
    for th in cands:
        if _estimate_vmem_bytes(C, th, W) <= budget:
            return th
    return cands[-1]


def srm_layer(x, strip_height=None):
    """x: [N, 3, H, W] float32 -> [N, 6, H, W] float32 (SRM maps ++ input)."""
    N, C, H, W = x.shape
    assert C == 3, "SRMlayer forward indexes channels 0, 1, 2"
    x = x.astype(jnp.float32)

    vmem_cap = _vmem_capacity_bytes()
    if strip_height is None:
        TH = _pick_strip_height(H, W, C, int(vmem_cap * 0.8))
    else:
        TH = int(strip_height)
        assert H % TH == 0 and (TH % 8 == 0 or TH == H), "bad strip_height"
    S = H // TH

    kernel = _make_srm_kernel(S, TH, W, C)

    main_spec = pl.BlockSpec((pl.Squeezed(), C, TH, W), lambda n, s: (n, 0, s, 0))
    in_specs = [main_spec]
    operands = [x]
    if S > 1:
        bps = TH // 8                      # 8-row blocks per strip (TH % 8 == 0 here)
        last8 = pl.cdiv(H, 8) - 1
        top_spec = pl.BlockSpec(
            (pl.Squeezed(), C, 8, W),
            lambda n, s: (n, 0, jnp.maximum(s * bps - 1, 0), 0))
        bot_spec = pl.BlockSpec(
            (pl.Squeezed(), C, 8, W),
            lambda n, s: (n, 0, jnp.minimum((s + 1) * bps, last8), 0))
        in_specs += [top_spec, bot_spec]
        operands += [x, x]

    out_spec = pl.BlockSpec((pl.Squeezed(), 2 * C, TH, W), lambda n, s: (n, 0, s, 0))

    need = _estimate_vmem_bytes(C, TH, W)
    vmem_limit = int(min(max(need + (8 << 20), 32 << 20), vmem_cap - (2 << 20)))

    return pl.pallas_call(
        kernel,
        out_shape=jax.ShapeDtypeStruct((N, 2 * C, H, W), jnp.float32),
        grid_spec=pltpu.PrefetchScalarGridSpec(
            num_scalar_prefetch=0,
            grid=(N, S),
            in_specs=in_specs,
            out_specs=out_spec,
            scratch_shapes=[pltpu.VMEM((C, TH + 16, W), jnp.float32)],
        ),
        compiler_params=pltpu.CompilerParams(
            dimension_semantics=("parallel", "parallel"),
            vmem_limit_bytes=vmem_limit,
        ),
    )(*operands)


def _reference(x):
    """Pure numpy reference matching the PyTorch module (per-filter conv + sum)."""
    x = np.asarray(jax.device_get(x), dtype=np.float32)
    N, C, H, W = x.shape
    xpad = np.pad(x, ((0, 0), (0, 0), (2, 2), (2, 2)))
    srm = np.zeros((N, C, H, W), dtype=np.float32)
    for f in range(3):
        w = SRM_FILTERS[f]
        for i in range(5):
            for j in range(5):
                if w[i, j] != 0.0:
                    srm += w[i, j] * xpad[:, :, i:i + H, j:j + W]
    return np.concatenate([srm, x], axis=1)


if __name__ == "__main__":
    key = jax.random.PRNGKey(0)
    N, C, H, W = 2, 3, 16, 16
    x = jax.random.normal(key, (N, C, H, W), dtype=jnp.float32)

    out = srm_layer(x)
    jax.block_until_ready(out)

    assert out.shape == (N, 2 * C, H, W), out.shape
    assert out.dtype == jnp.float32
    assert bool(jnp.allclose(out[:, C:], x))          # exact input passthrough
    ref = _reference(x)
    assert np.allclose(np.asarray(jax.device_get(out)), ref, atol=1e-4, rtol=1e-4)

    # exercise the multi-strip (halo-block) path at a small size
    x2 = jax.random.normal(jax.random.PRNGKey(0), (1, 3, 32, 16), dtype=jnp.float32)
    ref2 = _reference(x2)
    for th in (8, 16):
        out2 = srm_layer(x2, strip_height=th)
        jax.block_until_ready(out2)
        assert np.allclose(np.asarray(jax.device_get(out2)), ref2,
                           atol=1e-4, rtol=1e-4), f"strip_height={th} mismatch"

    print("KERNEL_OK")
</pallas_src>

<mosaic_0001>
module attributes {stable_mosaic.version = 11 : i64} {
  func.func @kernel(%arg0: i32, %arg1: i32, %arg2: memref<1x3x16x16xf32, #tpu.memory_space<vmem>>, %arg3: memref<1x6x16x16xf32, #tpu.memory_space<vmem>>, %arg4: memref<3x32x16xf32, #tpu.memory_space<vmem>>) attributes {dimension_semantics = [#tpu.dimension_semantics<parallel>, #tpu.dimension_semantics<parallel>], iteration_bounds = array<i64: 2, 1>, scalar_prefetch = 0 : i64, scratch_operands = 1 : i64, tpu.core_type = #tpu.core_type<tc>, window_params = [{transform_indices = @transform_0, window_bounds = array<i64: 1, 3, 16, 16>}, {transform_indices = @transform_1, window_bounds = array<i64: 1, 6, 16, 16>}]} {
    %c0 = arith.constant 0 : index
    %c0_0 = arith.constant 0 : index
    %c0_1 = arith.constant 0 : index
    %c0_2 = arith.constant 0 : index
    %0 = vector.load %arg2[%c0, %c0_0, %c0_1, %c0_2] : memref<1x3x16x16xf32, #tpu.memory_space<vmem>>, vector<1x3x16x16xf32>
    %1 = vector.shape_cast %0 : vector<1x3x16x16xf32> to vector<3x16x16xf32>
    %c0_3 = arith.constant 0 : index
    %c8 = arith.constant 8 : index
    %c0_4 = arith.constant 0 : index
    %2 = vector.load %arg4[%c0_3, %c8, %c0_4] : memref<3x32x16xf32, #tpu.memory_space<vmem>>, vector<3x16x16xf32>
    tpu.vector_store %arg4[%c0_3, %c8, %c0_4], %1 {strides = array<i32>} : memref<3x32x16xf32, #tpu.memory_space<vmem>>, vector<3x16x16xf32>,
    %cst = arith.constant 0.000000e+00 : f32
    %3 = vector.broadcast %cst : f32 to vector<3x2x16xf32>
    %c0_5 = arith.constant 0 : index
    %c6 = arith.constant 6 : index
    %c0_6 = arith.constant 0 : index
    %4 = vector.load %arg4[%c0_5, %c6, %c0_6] : memref<3x32x16xf32, #tpu.memory_space<vmem>>, vector<3x2x16xf32>
    tpu.vector_store %arg4[%c0_5, %c6, %c0_6], %3 {strides = array<i32>} : memref<3x32x16xf32, #tpu.memory_space<vmem>>, vector<3x2x16xf32>,
    %cst_7 = arith.constant 0.000000e+00 : f32
    %5 = vector.broadcast %cst_7 : f32 to vector<3x2x16xf32>
    %c0_8 = arith.constant 0 : index
    %c24 = arith.constant 24 : index
    %c0_9 = arith.constant 0 : index
    %6 = vector.load %arg4[%c0_8, %c24, %c0_9] : memref<3x32x16xf32, #tpu.memory_space<vmem>>, vector<3x2x16xf32>
    tpu.vector_store %arg4[%c0_8, %c24, %c0_9], %5 {strides = array<i32>} : memref<3x32x16xf32, #tpu.memory_space<vmem>>, vector<3x2x16xf32>,
    %7 = tpu.iota {dimensions = array<i32: 2>} : vector<3x8x16xi32>
    %c2_i32 = arith.constant 2 : i32
    %8 = vector.broadcast %c2_i32 : i32 to vector<3x8x16xi32>
    %9 = arith.cmpi sge, %7, %8 : vector<3x8x16xi32>
    %c1_i32 = arith.constant 1 : i32
    %10 = vector.broadcast %c1_i32 : i32 to vector<3x8x16xi32>
    %11 = arith.cmpi sge, %7, %10 : vector<3x8x16xi32>
    %c15_i32 = arith.constant 15 : i32
    %12 = vector.broadcast %c15_i32 : i32 to vector<3x8x16xi32>
    %13 = arith.cmpi slt, %7, %12 : vector<3x8x16xi32>
    %c14_i32 = arith.constant 14 : i32
    %14 = vector.broadcast %c14_i32 : i32 to vector<3x8x16xi32>
    %15 = arith.cmpi slt, %7, %14 : vector<3x8x16xi32>
    %c0_10 = arith.constant 0 : index
    %c6_11 = arith.constant 6 : index
    %c0_12 = arith.constant 0 : index
    %16 = vector.load %arg4[%c0_10, %c6_11, %c0_12] : memref<3x32x16xf32, #tpu.memory_space<vmem>>, vector<3x8x16xf32>
    %c0_13 = arith.constant 0 : index
    %c7 = arith.constant 7 : index
    %c0_14 = arith.constant 0 : index
    %17 = vector.load %arg4[%c0_13, %c7, %c0_14] : memref<3x32x16xf32, #tpu.memory_space<vmem>>, vector<3x8x16xf32>
    %c0_15 = arith.constant 0 : index
    %c8_16 = arith.constant 8 : index
    %c0_17 = arith.constant 0 : index
    %18 = vector.load %arg4[%c0_15, %c8_16, %c0_17] : memref<3x32x16xf32, #tpu.memory_space<vmem>>, vector<3x8x16xf32>
    %c0_18 = arith.constant 0 : index
    %c9 = arith.constant 9 : index
    %c0_19 = arith.constant 0 : index
    %19 = vector.load %arg4[%c0_18, %c9, %c0_19] : memref<3x32x16xf32, #tpu.memory_space<vmem>>, vector<3x8x16xf32>
    %c0_20 = arith.constant 0 : index
    %c10 = arith.constant 10 : index
    %c0_21 = arith.constant 0 : index
    %20 = vector.load %arg4[%c0_20, %c10, %c0_21] : memref<3x32x16xf32, #tpu.memory_space<vmem>>, vector<3x8x16xf32>
    %21 = arith.addf %16, %20 : vector<3x8x16xf32>
    %22 = arith.addf %17, %19 : vector<3x8x16xf32>
    %cst_22 = arith.constant -0.0833333358 : f32
    %23 = vector.broadcast %cst_22 : f32 to vector<3x8x16xf32>
    %24 = arith.mulf %23, %21 : vector<3x8x16xf32>
    %cst_23 = arith.constant 0.166666672 : f32
    %25 = vector.broadcast %cst_23 : f32 to vector<3x8x16xf32>
    %26 = arith.mulf %25, %22 : vector<3x8x16xf32>
    %27 = arith.addf %24, %26 : vector<3x8x16xf32>
    %cst_24 = arith.constant -0.166666672 : f32
    %28 = vector.broadcast %cst_24 : f32 to vector<3x8x16xf32>
    %29 = arith.mulf %28, %18 : vector<3x8x16xf32>
    %30 = arith.addf %27, %29 : vector<3x8x16xf32>
    %cst_25 = arith.constant 0.166666672 : f32
    %31 = vector.broadcast %cst_25 : f32 to vector<3x8x16xf32>
    %32 = arith.mulf %31, %21 : vector<3x8x16xf32>
    %cst_26 = arith.constant -7.500000e-01 : f32
    %33 = vector.broadcast %cst_26 : f32 to vector<3x8x16xf32>
    %34 = arith.mulf %33, %22 : vector<3x8x16xf32>
    %35 = arith.addf %32, %34 : vector<3x8x16xf32>
    %cst_27 = arith.constant 1.66666675 : f32
    %36 = vector.broadcast %cst_27 : f32 to vector<3x8x16xf32>
    %37 = arith.mulf %36, %18 : vector<3x8x16xf32>
    %38 = arith.addf %35, %37 : vector<3x8x16xf32>
    %cst_28 = arith.constant -0.166666672 : f32
    %39 = vector.broadcast %cst_28 : f32 to vector<3x8x16xf32>
    %40 = arith.mulf %39, %21 : vector<3x8x16xf32>
    %cst_29 = arith.constant 1.16666675 : f32
    %41 = vector.broadcast %cst_29 : f32 to vector<3x8x16xf32>
    %42 = arith.mulf %41, %22 : vector<3x8x16xf32>
    %43 = arith.addf %40, %42 : vector<3x8x16xf32>
    %cst_30 = arith.constant -3.000000e+00 : f32
    %44 = vector.broadcast %cst_30 : f32 to vector<3x8x16xf32>
    %45 = arith.mulf %44, %18 : vector<3x8x16xf32>
    %46 = arith.addf %43, %45 : vector<3x8x16xf32>
    %c2_i32_31 = arith.constant 2 : i32
    %47 = tpu.dynamic_rotate %30 by %c2_i32_31 dim 2 : vector<3x8x16xf32>, i32 -> vector<3x8x16xf32>
    %cst_32 = arith.constant 0.000000e+00 : f32
    %48 = vector.broadcast %cst_32 : f32 to vector<3x8x16xf32>
    %49 = arith.select %9, %47, %48 : vector<3x8x16xi1>, vector<3x8x16xf32>
    %50 = arith.addf %46, %49 : vector<3x8x16xf32>
    %c14_i32_33 = arith.constant 14 : i32
    %51 = tpu.dynamic_rotate %30 by %c14_i32_33 dim 2 : vector<3x8x16xf32>, i32 -> vector<3x8x16xf32>
    %cst_34 = arith.constant 0.000000e+00 : f32
    %52 = vector.broadcast %cst_34 : f32 to vector<3x8x16xf32>
    %53 = arith.select %15, %51, %52 : vector<3x8x16xi1>, vector<3x8x16xf32>
    %54 = arith.addf %50, %53 : vector<3x8x16xf32>
    %c1_i32_35 = arith.constant 1 : i32
    %55 = tpu.dynamic_rotate %38 by %c1_i32_35 dim 2 : vector<3x8x16xf32>, i32 -> vector<3x8x16xf32>
    %cst_36 = arith.constant 0.000000e+00 : f32
    %56 = vector.broadcast %cst_36 : f32 to vector<3x8x16xf32>
    %57 = arith.select %11, %55, %56 : vector<3x8x16xi1>, vector<3x8x16xf32>
    %58 = arith.addf %54, %57 : vector<3x8x16xf32>
    %c15_i32_37 = arith.constant 15 : i32
    %59 = tpu.dynamic_rotate %38 by %c15_i32_37 dim 2 : vector<3x8x16xf32>, i32 -> vector<3x8x16xf32>
    %cst_38 = arith.constant 0.000000e+00 : f32
    %60 = vector.broadcast %cst_38 : f32 to vector<3x8x16xf32>
    %61 = arith.select %13, %59, %60 : vector<3x8x16xi1>, vector<3x8x16xf32>
    %62 = arith.addf %58, %61 : vector<3x8x16xf32>
    %c0_39 = arith.constant 0 : index
    %c0_40 = arith.constant 0 : index
    %c0_41 = arith.constant 0 : index
    %c0_42 = arith.constant 0 : index
    %63 = vector.load %arg3[%c0_39, %c0_40, %c0_41, %c0_42] : memref<1x6x16x16xf32, #tpu.memory_space<vmem>>, vector<1x3x8x16xf32>
    %64 = vector.shape_cast %63 : vector<1x3x8x16xf32> to vector<3x8x16xf32>
    %65 = vector.shape_cast %62 : vector<3x8x16xf32> to vector<1x3x8x16xf32>
    tpu.vector_store %arg3[%c0_39, %c0_40, %c0_41, %c0_42], %65 {strides = array<i32>} : memref<1x6x16x16xf32, #tpu.memory_space<vmem>>, vector<1x3x8x16xf32>,
    %c0_43 = arith.constant 0 : index
    %c3 = arith.constant 3 : index
    %c0_44 = arith.constant 0 : index
    %c0_45 = arith.constant 0 : index
    %66 = vector.load %arg3[%c0_43, %c3, %c0_44, %c0_45] : memref<1x6x16x16xf32, #tpu.memory_space<vmem>>, vector<1x3x8x16xf32>
    %67 = vector.shape_cast %66 : vector<1x3x8x16xf32> to vector<3x8x16xf32>
    %68 = vector.shape_cast %18 : vector<3x8x16xf32> to vector<1x3x8x16xf32>
    tpu.vector_store %arg3[%c0_43, %c3, %c0_44, %c0_45], %68 {strides = array<i32>} : memref<1x6x16x16xf32, #tpu.memory_space<vmem>>, vector<1x3x8x16xf32>,
    %c0_46 = arith.constant 0 : index
    %c14 = arith.constant 14 : index
    %c0_47 = arith.constant 0 : index
    %69 = vector.load %arg4[%c0_46, %c14, %c0_47] : memref<3x32x16xf32, #tpu.memory_space<vmem>>, vector<3x8x16xf32>
    %c0_48 = arith.constant 0 : index
    %c15 = arith.constant 15 : index
    %c0_49 = arith.constant 0 : index
    %70 = vector.load %arg4[%c0_48, %c15, %c0_49] : memref<3x32x16xf32, #tpu.memory_space<vmem>>, vector<3x8x16xf32>
    %c0_50 = arith.constant 0 : index
    %c16 = arith.constant 16 : index
    %c0_51 = arith.constant 0 : index
    %71 = vector.load %arg4[%c0_50, %c16, %c0_51] : memref<3x32x16xf32, #tpu.memory_space<vmem>>, vector<3x8x16xf32>
    %c0_52 = arith.constant 0 : index
    %c17 = arith.constant 17 : index
    %c0_53 = arith.constant 0 : index
    %72 = vector.load %arg4[%c0_52, %c17, %c0_53] : memref<3x32x16xf32, #tpu.memory_space<vmem>>, vector<3x8x16xf32>
    %c0_54 = arith.constant 0 : index
    %c18 = arith.constant 18 : index
    %c0_55 = arith.constant 0 : index
    %73 = vector.load %arg4[%c0_54, %c18, %c0_55] : memref<3x32x16xf32, #tpu.memory_space<vmem>>, vector<3x8x16xf32>
    %74 = arith.addf %69, %73 : vector<3x8x16xf32>
    %75 = arith.addf %70, %72 : vector<3x8x16xf32>
    %cst_56 = arith.constant -0.0833333358 : f32
    %76 = vector.broadcast %cst_56 : f32 to vector<3x8x16xf32>
    %77 = arith.mulf %76, %74 : vector<3x8x16xf32>
    %cst_57 = arith.constant 0.166666672 : f32
    %78 = vector.broadcast %cst_57 : f32 to vector<3x8x16xf32>
    %79 = arith.mulf %78, %75 : vector<3x8x16xf32>
    %80 = arith.addf %77, %79 : vector<3x8x16xf32>
    %cst_58 = arith.constant -0.166666672 : f32
    %81 = vector.broadcast %cst_58 : f32 to vector<3x8x16xf32>
    %82 = arith.mulf %81, %71 : vector<3x8x16xf32>
    %83 = arith.addf %80, %82 : vector<3x8x16xf32>
    %cst_59 = arith.constant 0.166666672 : f32
    %84 = vector.broadcast %cst_59 : f32 to vector<3x8x16xf32>
    %85 = arith.mulf %84, %74 : vector<3x8x16xf32>
    %cst_60 = arith.constant -7.500000e-01 : f32
    %86 = vector.broadcast %cst_60 : f32 to vector<3x8x16xf32>
    %87 = arith.mulf %86, %75 : vector<3x8x16xf32>
    %88 = arith.addf %85, %87 : vector<3x8x16xf32>
    %cst_61 = arith.constant 1.66666675 : f32
    %89 = vector.broadcast %cst_61 : f32 to vector<3x8x16xf32>
    %90 = arith.mulf %89, %71 : vector<3x8x16xf32>
    %91 = arith.addf %88, %90 : vector<3x8x16xf32>
    %cst_62 = arith.constant -0.166666672 : f32
    %92 = vector.broadcast %cst_62 : f32 to vector<3x8x16xf32>
    %93 = arith.mulf %92, %74 : vector<3x8x16xf32>
    %cst_63 = arith.constant 1.16666675 : f32
    %94 = vector.broadcast %cst_63 : f32 to vector<3x8x16xf32>
    %95 = arith.mulf %94, %75 : vector<3x8x16xf32>
    %96 = arith.addf %93, %95 : vector<3x8x16xf32>
    %cst_64 = arith.constant -3.000000e+00 : f32
    %97 = vector.broadcast %cst_64 : f32 to vector<3x8x16xf32>
    %98 = arith.mulf %97, %71 : vector<3x8x16xf32>
    %99 = arith.addf %96, %98 : vector<3x8x16xf32>
    %c2_i32_65 = arith.constant 2 : i32
    %100 = tpu.dynamic_rotate %83 by %c2_i32_65 dim 2 : vector<3x8x16xf32>, i32 -> vector<3x8x16xf32>
    %cst_66 = arith.constant 0.000000e+00 : f32
    %101 = vector.broadcast %cst_66 : f32 to vector<3x8x16xf32>
    %102 = arith.select %9, %100, %101 : vector<3x8x16xi1>, vector<3x8x16xf32>
    %103 = arith.addf %99, %102 : vector<3x8x16xf32>
    %c14_i32_67 = arith.constant 14 : i32
    %104 = tpu.dynamic_rotate %83 by %c14_i32_67 dim 2 : vector<3x8x16xf32>, i32 -> vector<3x8x16xf32>
    %cst_68 = arith.constant 0.000000e+00 : f32
    %105 = vector.broadcast %cst_68 : f32 to vector<3x8x16xf32>
    %106 = arith.select %15, %104, %105 : vector<3x8x16xi1>, vector<3x8x16xf32>
    %107 = arith.addf %103, %106 : vector<3x8x16xf32>
    %c1_i32_69 = arith.constant 1 : i32
    %108 = tpu.dynamic_rotate %91 by %c1_i32_69 dim 2 : vector<3x8x16xf32>, i32 -> vector<3x8x16xf32>
    %cst_70 = arith.constant 0.000000e+00 : f32
    %109 = vector.broadcast %cst_70 : f32 to vector<3x8x16xf32>
    %110 = arith.select %11, %108, %109 : vector<3x8x16xi1>, vector<3x8x16xf32>
    %111 = arith.addf %107, %110 : vector<3x8x16xf32>
    %c15_i32_71 = arith.constant 15 : i32
    %112 = tpu.dynamic_rotate %91 by %c15_i32_71 dim 2 : vector<3x8x16xf32>, i32 -> vector<3x8x16xf32>
    %cst_72 = arith.constant 0.000000e+00 : f32
    %113 = vector.broadcast %cst_72 : f32 to vector<3x8x16xf32>
    %114 = arith.select %13, %112, %113 : vector<3x8x16xi1>, vector<3x8x16xf32>
    %115 = arith.addf %111, %114 : vector<3x8x16xf32>
    %c0_73 = arith.constant 0 : index
    %c0_74 = arith.constant 0 : index
    %c8_75 = arith.constant 8 : index
    %c0_76 = arith.constant 0 : index
    %116 = vector.load %arg3[%c0_73, %c0_74, %c8_75, %c0_76] : memref<1x6x16x16xf32, #tpu.memory_space<vmem>>, vector<1x3x8x16xf32>
    %117 = vector.shape_cast %116 : vector<1x3x8x16xf32> to vector<3x8x16xf32>
    %118 = vector.shape_cast %115 : vector<3x8x16xf32> to vector<1x3x8x16xf32>
    tpu.vector_store %arg3[%c0_73, %c0_74, %c8_75, %c0_76], %118 {strides = array<i32>} : memref<1x6x16x16xf32, #tpu.memory_space<vmem>>, vector<1x3x8x16xf32>,
    %c0_77 = arith.constant 0 : index
    %c3_78 = arith.constant 3 : index
    %c8_79 = arith.constant 8 : index
    %c0_80 = arith.constant 0 : index
    %119 = vector.load %arg3[%c0_77, %c3_78, %c8_79, %c0_80] : memref<1x6x16x16xf32, #tpu.memory_space<vmem>>, vector<1x3x8x16xf32>
    %120 = vector.shape_cast %119 : vector<1x3x8x16xf32> to vector<3x8x16xf32>
    %121 = vector.shape_cast %71 : vector<3x8x16xf32> to vector<1x3x8x16xf32>
    tpu.vector_store %arg3[%c0_77, %c3_78, %c8_79, %c0_80], %121 {strides = array<i32>} : memref<1x6x16x16xf32, #tpu.memory_space<vmem>>, vector<1x3x8x16xf32>,
    return
  }
  func.func @transform_0(%arg0: i32, %arg1: i32) -> (i32, i32, i32, i32) {
    %c0_i32 = arith.constant 0 : i32
    %c0_i32_0 = arith.constant 0 : i32
    %c0_i32_1 = arith.constant 0 : i32
    return %arg0, %c0_i32, %arg1, %c0_i32_0 : i32, i32, i32, i32
  }
  func.func @transform_1(%arg0: i32, %arg1: i32) -> (i32, i32, i32, i32) {
    %c0_i32 = arith.constant 0 : i32
    %c0_i32_0 = arith.constant 0 : i32
    %c0_i32_1 = arith.constant 0 : i32
    return %arg0, %c0_i32, %arg1, %c0_i32_0 : i32, i32, i32, i32
  }
}

</mosaic_0001>

<bundles_post_ra>
// kernel: tpu_custom_call.1
= control target key start
LH: loop header
LB: loop body
LE: loop exit
PB: predicated region body
PF: predicated region fallthrough
CT: control target
= control target key end

     0   :  { %6 = vsyncpa [#allocation4], 0  ;;  %s1347_s0 = inlined_call_operand.hbm [shape: f32[2,3,16,16], index: 0, kind: input, shape index: {}]   ;;  %s1348_s1 = inlined_call_operand.hbm [shape: f32[2,6,16,16], index: 1, kind: output, shape index: {}]  }
   0x1   :  { %8 = vsyncpa [#allocation4 + $0x1], 0 }
   0x2   :  { %9 = vsyncpa [#allocation5], 0 }
   0x3   :  { %11 = vsyncpa [#allocation5 + $0x1], 0  ;;  %s862_s6 = smov 0   ;;  %s864_s7 = smov 0  }
   0x4   :  { %s866_s8 = smov 0   ;;  %s868_s9 = smov 0  }
   0x5   :  { %s870_s10 = smov 0   ;;  %s872_s11 = smov 0  }
   0x6 LB: > { %s634_s12 = sadd.s32 4294967295, %s838_s11   ;;  %s635_s13 = sadd.s32 4294967294, %s838_s11   ;;  %s838_s11 = sphi %s872_s11, %s17_s11   ;;  %s834_s10 = sphi %s870_s10, %s1363_s10   ;;  %s830_s9 = sphi %s868_s9, %s1362_s9   ;;  %s826_s8 = sphi %s866_s8, %s1361_s8   ;;  %s822_s7 = sphi %s864_s7, %s1360_s7   ;;  %s818_s6 = sphi %s862_s6, %s1359_s6  }
   0x7   : > { %s29_s14 = sadd.s32 1, %s834_s10  ;;  %s38_s15 = sadd.s32 1, %s826_s8 }
   0x8   : > { %p31_p0 = scmp.ge.s32.totalorder %s29_s14, 2  ;;  %p45_p1 = scmp.ne.s32.totalorder %s826_s8, %s822_s7 }
   0x9   : > { %p46_p2 = scmp.eq.s32.totalorder %s838_s11, 0  ;;  %p51_p3 = scmp.ne.s32.totalorder %s822_s7, %s818_s6 }
   0xa   : > { %s1365_s14 = smov (%p31_p0, %s29_s14), 0  ;;  %p52_p5 = scmp.eq.s32.totalorder %s634_s12, 0 }
   0xb   : > { %p903_p4 = por %p46_p2, %p45_p1  ;;  %s33_s17 = ssub.s32 %s834_s10, %s1365_s14 }
   0xc   : > { %p77_p6 = scmp.eq.s32.totalorder %s634_s12, 1  ;;  %p36_p7 = scmp.eq.s32.totalorder %s33_s17, 0 }
   0xd   : > { %p909_p8 = por %p52_p5, %p51_p3  ;;  %p83_p10 = scmp.eq.s32.totalorder %s635_s13, 1 }
   0xe   : > { %p913_p9 = por %p77_p6, %p45_p1  ;;  %p666_p13 = scmp.lt.s32.totalorder %s838_s11, 2 }
   0xf   : > { %s918_s20 = scalar_select %p36_p7, %s826_s8, %s38_s15  }
  0x10   : > { %s1352_s19 = scalar_select %p913_p9, 1, 0 }
  0x11   : > { %p920_p11 = por %p83_p10, %p51_p3  ;;  %s103_s22 = sand.u32 1, %s826_s8  }
  0x12   : > { %s649_s23 = smul.u32 48, %s103_s22  ;;  %p930_p0 = pnand %p666_p13, %p903_p4 }
  0x13   : > { %s1353_s21 = scalar_select %p920_p11, 1, 0 }
  0x14   : > { %s650_s24 = smul.u32 768, %s834_s10  ;;  %s107_s29 = scalar_lea.vmem [#allocation3], %s649_s23 }
  0x15   : > { %s116_s30 = sshll.u32 %s107_s29, 4  ;;  %s942_s2 = scalar_lea.sflag [#allocation4], %s103_s22  ;;  %s939_s30 = int_to_ptr.vmem [resolvable:$true] %s116_s30 }
  0x16   : > { %s937_s28 = scalar_lea.hbm %s1347_s0, %s650_s24  ;;  %p728_p3 = pneg %p930_p0 }
  0x17   : > { %s726_s3 = scalar_lea.hbm %s937_s28, 768  ;;  %s731_s12 = scalar_lea.hbm %s1347_s0, 1536 }
  0x18   : > { %p727_p2 = scmp.ne.s32.totalorder %s937_s28, %s726_s3  ;;  %p732_p6 = scmp.lt.u32.totalorder %s937_s28, %s1347_s0 }
  0x19   : > { %p733_p7 = scmp.lt.u32.totalorder %s731_s12, %s726_s3  ;;  %p735_p13 = scmp.lt.u32.totalorder %s726_s3, %s937_s28 }
  0x1a   : > { %p729_p4 = pnand %p728_p3, %p727_p2 }
  0x1b   : > { %p734_p10 = por %p733_p7, %p732_p6 }
  0x1c   : > { %p730_p5 = pneg %p729_p4 }
  0x1d   : > { %p736_p12 = por %p735_p13, %p734_p10 }
  0x1f   : > { %p737_p1 = pnand %p736_p12, %p730_p5 }
  0x21   : > { %740 = shalt.err (!%p737_p1)
}
  0x22   : > { %s741_s16 = scalar_lea.vmem %s939_s30, 768  ;;  %s840_s17 = smov [#allocation3]  }
  0x23   : > { %p742_p2 = scmp.ne.s32.totalorder %s939_s30, %s741_s16  ;;  %s746_s22 = sshll.u32 %s840_s17, 4  ;;  %s747_s22 = int_to_ptr.vmem [resolvable:$false] %s746_s22 }
  0x24   : > { %s748_s23 = scalar_lea.vmem %s747_s22, 1536  ;;  %p749_p9 = scmp.lt.s32.totalorder %s939_s30, %s747_s22 }
  0x25   : > { %p744_p4 = pnand %p742_p2, %p728_p3  ;;  %p750_p6 = scmp.lt.s32.totalorder %s748_s23, %s741_s16 }
  0x27   : > { %p745_p11 = pneg %p744_p4  ;;  %p751_p7 = por %p750_p6, %p749_p9 }
  0x29   : > { %p752_p10 = pnand %p751_p7, %p745_p11 }
  0x2b   : > { %755 = shalt.err (!%p752_p10)
}
  0x2c   : > { %s841_s24 = smov 128   ;;  %s842_s26 = smov 8  }
  0x2d   : > { %661 = dma.hbm_to_vmem [thread:$0]  (!%p930_p0), %s937_s28, 768, %s939_s30, %s942_s2, %s841_s24, %s841_s24, %s842_s26  }
  0x2e   : > { %p124_p12 = scmp.lt.s32.totalorder %s838_s11, 3  ;;  %p1355_p1 = scmp.ge.s32.totalorder %s838_s11, 1 }
  0x30   : > { %p125_p3 = pnand %p1355_p1, %p124_p12 }
  0x31   : > { %s974_s27 = sand.u32 (!%p125_p3), 1, %s822_s7  }
  0x32   : > { %128 = sbr.rel (%p125_p3) target bundleno = 501 (0x1f5), region = 24  ;;  %s131_s3 = scalar_lea.sflag (!%p125_p3), [#allocation4], %s974_s27 }
  0x33   : > { %s651_s29 = smul.u32 (!%p125_p3), 48, %s974_s27 }
  0x35   : > { %s134_s4 = scalar_lea.vmem (!%p125_p3), [#allocation3], %s651_s29 }
  0x39   : > { %809 = dma.done.wait (%p909_p8), %s131_s3, 768  }
  0x3a   : > { %811 = vsyncadd (%p909_p8), %s131_s3, 4294966528  ;;  %vm168_vm0 = vcmask 123904   ;;  %v843_v0 = vmov 0.0   ;;  %vm161_vm1 = vcmask 130048   ;;  %v155_v1 = vld [vmem:[%s134_s4] sm:$0xff]  ;;  %v156_v2 = vld [vmem:[%s134_s4 + $0x8] sm:$0xff] }
  0x3b   : > { %169 = vst.msk [vmem:[#allocation2 + $0x6] sm:$0x3] %vm168_vm0, %v843_v0  ;;  %170 = vst.msk [vmem:[#allocation2 + $0x26] sm:$0x3] %vm168_vm0, %v843_v0  ;;  %v159_v3 = vld [vmem:[%s134_s4 + $0x20] sm:$0xff]  ;;  %v160_v4 = vld [vmem:[%s134_s4 + $0x28] sm:$0xff] }
  0x3c   : > { %171 = vst.msk [vmem:[#allocation2 + $0x46] sm:$0x3] %vm168_vm0, %v843_v0  ;;  %172 = vst.msk [vmem:[#allocation2 + $0x18] sm:$0x3] %vm168_vm0, %v843_v0  ;;  %v157_v5 = vld [vmem:[%s134_s4 + $0x10] sm:$0xff]  ;;  %v158_v6 = vld [vmem:[%s134_s4 + $0x18] sm:$0xff] }
  0x3d   : > { %173 = vst.msk [vmem:[#allocation2 + $0x38] sm:$0x3] %vm168_vm0, %v843_v0  ;;  %174 = vst.msk [vmem:[#allocation2 + $0x58] sm:$0x3] %vm168_vm0, %v843_v0  ;;  %s652_s18 = smul.u32 96, %s974_s27  ;;  %s844_s28 = smov 16  }
  0x3e   : > { %162 = vst.msk [vmem:[#allocation2 + $0x8] sm:$0xff] %vm161_vm1, %v155_v1  ;;  %163 = vst.msk [vmem:[#allocation2 + $0x10] sm:$0xff] %vm161_vm1, %v156_v2  ;;  %vm247_vm2 = vcmask 1047680   ;;  %s845_s30 = smov 114   ;;  %s846_s2 = smov 126  }
  0x3f   : > { %166 = vst.msk [vmem:[#allocation2 + $0x48] sm:$0xff] %vm161_vm1, %v159_v3  ;;  %167 = vst.msk [vmem:[#allocation2 + $0x50] sm:$0xff] %vm161_vm1, %v160_v4  ;;  %s992_s25 = scalar_lea.vmem [#allocation6], %s652_s18  ;;  %s847_s5 = smov 113  }
  0x40   : > { %164 = vst.msk [vmem:[#allocation2 + $0x28] sm:$0xff] %vm161_vm1, %v157_v5  ;;  %165 = vst.msk [vmem:[#allocation2 + $0x30] sm:$0xff] %vm161_vm1, %v158_v6  ;;  %s848_s12 = smov 127   ;;  %s653_s13 = smul.u32 1536, %s830_s9 }
  0x41   : > { %s547_s15 = sshll.u32 %s992_s25, 4  ;;  %s532_s9 = scalar_lea.sflag [#allocation5], %s974_s27  ;;  %s1296_s15 = int_to_ptr.vmem [resolvable:$true] %s547_s15 }
  0x42   : > { %s1294_s22 = scalar_lea.hbm %s1348_s1, %s653_s13  ;;  %s756_s23 = scalar_lea.vmem %s1296_s15, 1536 }
  0x43   : > { %p757_p8 = scmp.ne.s32.totalorder %s1296_s15, %s756_s23  ;;  %p1356_p9 = scmp.ne.s32.totalorder %s1352_s19, 0 }
  0x44   : > { %s849_s24 = smov [#allocation6]  }
  0x45   : > { %v181_v7 = vld [vmem:[#allocation2 + $0x6] sm:$0xff]  ;;  %v357_v34 = vld [vmem:[#allocation2 + $0xe] sm:$0xff]  ;;  %p758_p11 = pnand %p757_p8, %p1356_p9  ;;  %s760_s26 = sshll.u32 %s849_s24, 4  ;;  %s761_s26 = int_to_ptr.vmem [resolvable:$false] %s760_s26 }
  0x46   : > { %v184_v8 = vld [vmem:[#allocation2 + $0x7] sm:$0xff]  ;;  %v360_v38 = vld [vmem:[#allocation2 + $0xf] sm:$0xff]  ;;  %s762_s29 = scalar_lea.vmem %s761_s26, 3072  ;;  %p763_p5 = scmp.lt.s32.totalorder %s1296_s15, %s761_s26 }
  0x47   : > { %v989_v9 = vld [vmem:[#allocation2 + $0x8] sm:$0xff]  ;;  %v1028_v39 = vld [vmem:[#allocation2 + $0x10] sm:$0xff]  ;;  %p759_p0 = pneg %p758_p11  ;;  %p764_p13 = scmp.lt.s32.totalorder %s762_s29, %s756_s23 }
  0x48   : > { %v190_v10 = vld [vmem:[#allocation2 + $0x9] sm:$0xff]  ;;  %v211_v12 = vmul.f32 -0.16666667, %v989_v9  ;;  %640 = vst.msk [vmem:[%s992_s25 + $0x30] sm:$0xff] %vm161_vm1, %v989_v9  ;;  %v1004_v19 = vmul.f32 1.6666667, %v989_v9 }
  0x49   : > { %v193_v11 = vld [vmem:[#allocation2 + $0xa] sm:$0xff]  ;;  %v999_v15 = vadd.f32 %v190_v10, %v184_v8  ;;  %v369_v43 = vld [vmem:[#allocation2 + $0x12] sm:$0xff]  ;;  %v387_v45 = vmul.f32 -0.16666667, %v1028_v39  ;;  %643 = vst.msk [vmem:[%s992_s25 + $0x38] sm:$0xff] %vm161_vm1, %v1028_v39  ;;  %p765_p2 = por %p764_p13, %p763_p5 }
  0x4a   : > { %v183_v13 = vld [vmem:[#allocation2 + $0x46] sm:$0xff]  ;;  %v997_v14 = vadd.f32 %v193_v11, %v181_v7  ;;  %v366_v40 = vld [vmem:[#allocation2 + $0x11] sm:$0xff]  ;;  %v1041_v50 = vadd.f32 %v369_v43, %v357_v34 }
  0x4b   : > { %v186_v16 = vld [vmem:[#allocation2 + $0x47] sm:$0xff]  ;;  %v205_v26 = vmul.f32 0.16666667, %v999_v15  ;;  %v220_v41 = vmul.f32 -0.75, %v999_v15  ;;  %v1032_v44 = vadd.f32 %v366_v40, %v360_v38  ;;  %v361_v51 = vld [vmem:[#allocation2 + $0x2f] sm:$0xff]  ;;  %p766_p4 = pnand %p765_p2, %p759_p0 }
  0x4c   : > { %v1001_v17 = vld [vmem:[#allocation2 + $0x48] sm:$0xff]  ;;  %v202_v25 = vmul.f32 -0.083333336, %v997_v14  ;;  %v1043_v52 = vld [vmem:[#allocation2 + $0x30] sm:$0xff]  ;;  %v378_v61 = vmul.f32 -0.083333336, %v1041_v50 }
  0x4d   : > { %v192_v18 = vld [vmem:[#allocation2 + $0x49] sm:$0xff]  ;;  %v213_v22 = vmul.f32 -0.16666667, %v1001_v17  ;;  %642 = vst.msk [vmem:[%s992_s25 + $0x50] sm:$0xff] %vm161_vm1, %v1001_v17  ;;  %v367_v53 = vld [vmem:[#allocation2 + $0x31] sm:$0xff]  ;;  %644 = vst.msk [vmem:[%s992_s25 + $0x48] sm:$0xff] %vm161_vm1, %v1043_v52 }
  0x4e   : > { %v195_v20 = vld [vmem:[#allocation2 + $0x4a] sm:$0xff]  ;;  %v1006_v21 = vadd.f32 %v192_v18, %v186_v16  ;;  %v208_v35 = vadd.f32 %v205_v26, %v202_v25  ;;  %v381_v54 = vmul.f32 0.16666667, %v1032_v44  ;;  %v370_v55 = vld [vmem:[#allocation2 + $0x32] sm:$0xff]  ;;  %v1046_v56 = vadd.f32 %v367_v53, %v361_v51 }
  0x4f   : > { %v182_v23 = vld [vmem:[#allocation2 + $0x26] sm:$0xff]  ;;  %v1014_v27 = vadd.f32 %v195_v20, %v183_v13  ;;  %v358_v46 = vld [vmem:[#allocation2 + $0x2e] sm:$0xff]  ;;  %v388_v57 = vmul.f32 -0.16666667, %v1043_v52  ;;  %v217_v13 = vmul.f32 0.16666667, %v997_v14 }
  0x50   : > { %v185_v24 = vld [vmem:[#allocation2 + $0x27] sm:$0xff]  ;;  %v207_v30 = vmul.f32 0.16666667, %v1006_v21  ;;  %v1038_v47 = vadd.f32 %v211_v12, %v208_v35  ;;  %v1057_v62 = vadd.f32 %v370_v55, %v358_v46  ;;  %v362_v63 = vld [vmem:[#allocation2 + $0x4f] sm:$0xff]  ;;  %v382_v2 = vmul.f32 0.16666667, %v1046_v56 }
  0x51   : > { %v1016_v28 = vld [vmem:[#allocation2 + $0x28] sm:$0xff]  ;;  %v204_v36 = vmul.f32 -0.083333336, %v1014_v27  ;;  %v1059_v0 = vld [vmem:[#allocation2 + $0x50] sm:$0xff]  ;;  %v384_v8 = vadd.f32 %v381_v54, %v378_v61  ;;  %v219_v26 = vmul.f32 0.16666667, %v1014_v27 }
  0x52   : > { %v191_v29 = vld [vmem:[#allocation2 + $0x29] sm:$0xff]  ;;  %v212_v33 = vmul.f32 -0.16666667, %v1016_v28  ;;  %641 = vst.msk [vmem:[%s992_s25 + $0x40] sm:$0xff] %vm161_vm1, %v1016_v28  ;;  %248 = vrot.lane.b32.xlu0 %v1038_v47, %s844_s28  ;;  %v368_v1 = vld [vmem:[#allocation2 + $0x51] sm:$0xff]  ;;  %645 = vst.msk [vmem:[%s992_s25 + $0x58] sm:$0xff] %vm161_vm1, %v1059_v0 }
  0x53   : > { %v194_v31 = vld [vmem:[#allocation2 + $0x2a] sm:$0xff]  ;;  %v1019_v32 = vadd.f32 %v191_v29, %v185_v24  ;;  %v210_v48 = vadd.f32 %v207_v30, %v204_v36  ;;  %v371_v3 = vld [vmem:[#allocation2 + $0x52] sm:$0xff]  ;;  %v1062_v4 = vadd.f32 %v368_v1, %v362_v63  ;;  %v389_v5 = vmul.f32 -0.16666667, %v1059_v0 }
  0x54   : > { %v1026_v37 = vadd.f32 %v194_v31, %v182_v23  ;;  %v359_v58 = vld [vmem:[#allocation2 + $0x4e] sm:$0xff]  ;;  %v379_v10 = vmul.f32 -0.083333336, %v1057_v62  ;;  %v1081_v18 = vadd.f32 %v387_v45, %v384_v8  ;;  %v227_v23 = vmul.f32 1.6666667, %v1016_v28 }
  0x55   : > { %v206_v42 = vmul.f32 0.16666667, %v1019_v32  ;;  %v1054_v59 = vadd.f32 %v213_v22, %v210_v48  ;;  %v221_v6 = vmul.f32 -0.75, %v1019_v32  ;;  %v1074_v11 = vadd.f32 %v371_v3, %v359_v58 }
  0x56   : > { %v203_v49 = vmul.f32 -0.083333336, %v1026_v37  ;;  %v383_v12 = vmul.f32 0.16666667, %v1062_v4  ;;  %v218_v16 = vmul.f32 0.16666667, %v1026_v37  ;;  %v385_v20 = vadd.f32 %v382_v2, %v379_v10 }
  0x57   : > { %254 = vrot.lane.b32.xlu1 %v1054_v59, %s844_s28  ;;  %v380_v22 = vmul.f32 -0.083333336, %v1074_v11  ;;  %v223_v24 = vadd.f32 %v220_v41, %v217_v13  ;;  %v222_v29 = vmul.f32 -0.75, %v1006_v21  ;;  %v228_v35 = vmul.f32 1.6666667, %v1001_v17 }
  0x58   : > { %v209_v60 = vadd.f32 %v206_v42, %v203_v49  ;;  %v224_v25 = vadd.f32 %v221_v6, %v218_v16  ;;  %v1089_v30 = vadd.f32 %v388_v57, %v385_v20  ;;  %v396_v36 = vmul.f32 -0.75, %v1032_v44 }
  0x59   : > { %v386_v31 = vadd.f32 %v383_v12, %v380_v22  ;;  %v1093_v34 = vadd.f32 %v1004_v19, %v223_v24  ;;  %v225_v40 = vadd.f32 %v222_v29, %v219_v26  ;;  %v394_v41 = vmul.f32 0.16666667, %v1057_v62 }
  0x5a   : > { %v1071_v7 = vadd.f32 %v212_v33, %v209_v60  ;;  %v393_v33 = vmul.f32 0.16666667, %v1041_v50  ;;  %v397_v42 = vmul.f32 -0.75, %v1046_v56  ;;  %v1103_v43 = vadd.f32 %v227_v23, %v224_v25 }
  0x5b   : > { %423 = vrot.lane.b32.xlu1 %v1081_v18, %s844_s28  ;;  %v1099_v38 = vadd.f32 %v389_v5, %v386_v31  ;;  %v402_v45 = vmul.f32 1.6666667, %v1028_v39  ;;  %v395_v46 = vmul.f32 0.16666667, %v1074_v11  ;;  %v398_v48 = vmul.f32 -0.75, %v1062_v4 }
  0x5c   : > { %251 = vrot.lane.b32.xlu0 %v1071_v7, %s844_s28  ;;  %v399_v19 = vadd.f32 %v396_v36, %v393_v33  ;;  %v1112_v49 = vadd.f32 %v228_v35, %v225_v40  ;;  %v400_v51 = vadd.f32 %v397_v42, %v394_v41  ;;  %v403_v53 = vmul.f32 1.6666667, %v1043_v52 }
  0x5d   : > { %v401_v55 = vadd.f32 %v398_v48, %v395_v46  ;;  %v404_v57 = vmul.f32 1.6666667, %v1059_v0 }
  0x5e   : > { %v1117_v54 = vadd.f32 %v402_v45, %v399_v19  ;;  %v1122_v58 = vadd.f32 %v403_v53, %v400_v51 }
  0x5f   : > { %429 = vrot.lane.b32.xlu1 %v1099_v38, %s844_s28  ;;  %v1126_v60 = vadd.f32 %v404_v57, %v401_v55 }
  0x60   : > { %426 = vrot.lane.b32.xlu0 %v1089_v30, %s844_s28 }
  0x63   : > { %302 = vrot.lane.b32.xlu1 %v1103_v43, %s844_s28 }
  0x64   : > { %299 = vrot.lane.b32.xlu0 %v1093_v34, %s844_s28 }
  0x67   : > { %474 = vrot.lane.b32.xlu1 %v1117_v54, %s844_s28 }
  0x68   : > { %305 = vrot.lane.b32.xlu0 %v1112_v49, %s844_s28 }
  0x6b   : > { %480 = vrot.lane.b32.xlu1 %v1126_v60, %s844_s28 }
  0x6c   : > { %477 = vrot.lane.b32.xlu0 %v1122_v58, %s844_s28 }
  0xc4   : > { %v249_v61 = vpop.permute.xlu0 %248 }
  0xc5   : > { %v250_v63 = vsel %vm247_vm2, %v249_v61, %v1038_v47 }
  0xc6   : > { %257 = vrot.lane.b32.xlu0 %v250_v63, %s844_s28 }
  0xc9   : > { %v255_v1 = vpop.permute.xlu1 %254 }
  0xca   : > { %v256_v2 = vsel %vm247_vm2, %v255_v1, %v1054_v59 }
  0xcb   : > { %261 = vrot.lane.b32.xlu0 %v256_v2, %s844_s28 }
  0xcd   : > { %v424_v6 = vpop.permute.xlu1 %423 }
  0xce   : > { %v252_v3 = vpop.permute.xlu0 %251  ;;  %v425_v8 = vsel %vm247_vm2, %v424_v6, %v1081_v18 }
  0xcf   : > { %v253_v5 = vsel %vm247_vm2, %v252_v3, %v1071_v7 }
  0xd0   : > { %259 = vrot.lane.b32.xlu1 %v253_v5, %s844_s28 }
  0xd1   : > { %v430_v13 = vpop.permute.xlu1 %429 }
  0xd2   : > { %v427_v10 = vpop.permute.xlu0 %426  ;;  %v431_v16 = vsel %vm247_vm2, %v430_v13, %v1099_v38 }
  0xd3   : > { %v428_v12 = vsel %vm247_vm2, %v427_v10, %v1089_v30 }
  0xd4   : > { %432 = vrot.lane.b32.xlu1 %v425_v8, %s844_s28  ;;  %434 = vrot.lane.b32.xlu0 %v428_v12, %s844_s28 }
  0xd5   : > { %v303_v23 = vpop.permute.xlu1 %302 }
  0xd6   : > { %v300_v20 = vpop.permute.xlu0 %299  ;;  %v304_v24 = vsel %vm247_vm2, %v303_v23, %v1103_v43 }
  0xd7   : > { %v301_v22 = vsel %vm247_vm2, %v300_v20, %v1093_v34  ;;  %v232_v20 = vmul.f32 -0.16666667, %v997_v14 }
  0xd8   : > { %436 = vrot.lane.b32.xlu1 %v431_v16, %s844_s28  ;;  %308 = vrot.lane.b32.xlu0 %v301_v22, %s844_s28  ;;  %v235_v22 = vmul.f32 1.1666667, %v999_v15 }
  0xd9   : > { %v475_v29 = vpop.permute.xlu1 %474 }
  0xda   : > { %v306_v25 = vpop.permute.xlu0 %305  ;;  %v476_v31 = vsel %vm247_vm2, %v475_v29, %v1117_v54  ;;  %v241_v29 = vmul.f32 -3.0, %v989_v9  ;;  %v409_v9 = vmul.f32 -0.16666667, %v1057_v62  ;;  %v413_v62 = vmul.f32 1.1666667, %v1062_v4 }
  0xdb   : > { %v307_v26 = vsel %vm247_vm2, %v306_v25, %v1112_v49  ;;  %v419_v4 = vmul.f32 -3.0, %v1059_v0 }
  0xdc   : > { %310 = vrot.lane.b32.xlu1 %v304_v24, %s844_s28  ;;  %312 = vrot.lane.b32.xlu0 %v307_v26, %s844_s28  ;;  %v238_v26 = vadd.f32 %v235_v22, %v232_v20 }
  0xdd   : > { %v481_v36 = vpop.permute.xlu1 %480 }
  0xde   : > { %v478_v33 = vpop.permute.xlu0 %477  ;;  %v482_v40 = vsel %vm247_vm2, %v481_v36, %v1126_v60  ;;  %v237_v36 = vmul.f32 1.1666667, %v1006_v21  ;;  %v243_v21 = vmul.f32 -3.0, %v1001_v17 }
  0xdf   : > { %v479_v35 = vsel %vm247_vm2, %v478_v33, %v1122_v58  ;;  %v236_v33 = vmul.f32 1.1666667, %v1019_v32  ;;  %v242_v32 = vmul.f32 -3.0, %v1016_v28  ;;  %v418_v28 = vmul.f32 -3.0, %v1043_v52 }
  0xe0   : > { %483 = vrot.lane.b32.xlu1 %v476_v31, %s844_s28  ;;  %485 = vrot.lane.b32.xlu0 %v479_v35, %s844_s28  ;;  %v233_v31 = vmul.f32 -0.16666667, %v1026_v37  ;;  %v234_v35 = vmul.f32 -0.16666667, %v1014_v27  ;;  %v412_v37 = vmul.f32 1.1666667, %v1046_v56 }
  0xe2   : > { %v240_v27 = vadd.f32 %v237_v36, %v234_v35  ;;  %v415_v56 = vadd.f32 %v412_v37, %v409_v9 }
  0xe4   : > { %487 = vrot.lane.b32.xlu1 %v482_v40, %s844_s28  ;;  %v408_v40 = vmul.f32 -0.16666667, %v1041_v50 }
 0x138   : > { %v258_v41 = vpop.permute.xlu0 %257 }
 0x139   : > { %v263_v42 = vsel %vm247_vm2, %v258_v41, %v1038_v47  ;;  %v411_v41 = vmul.f32 1.1666667, %v1032_v44  ;;  %v417_v44 = vmul.f32 -3.0, %v1028_v39 }
 0x13a   : > { %269 = vrot.lane.b32.xlu0 %v263_v42, %s845_s30 }
 0x13d   : > { %v262_v45 = vpop.permute.xlu0 %261 }
 0x13e   : > { %v265_v48 = vsel %vm247_vm2, %v262_v45, %v1054_v59 }
 0x13f   : > { %273 = vrot.lane.b32.xlu0 %v265_v48, %s845_s30 }
 0x142   : > { %v260_v19 = vpop.permute.xlu1 %259 }
 0x143   : > { %v264_v46 = vsel %vm247_vm2, %v260_v19, %v1071_v7  ;;  %v239_v19 = vadd.f32 %v236_v33, %v233_v31 }
 0x144   : > { %271 = vrot.lane.b32.xlu1 %v264_v46, %s845_s30 }
 0x146   : > { %v433_v51 = vpop.permute.xlu1 %432  ;;  %v435_v53 = vpop.permute.xlu0 %434 }
 0x147   : > { %v438_v55 = vsel %vm247_vm2, %v433_v51, %v1081_v18  ;;  %v439_v47 = vsel %vm247_vm2, %v435_v53, %v1089_v30  ;;  %v410_v51 = vmul.f32 -0.16666667, %v1074_v11 }
 0x148   : > { %444 = vrot.lane.b32.xlu1 %v438_v55, %s845_s30  ;;  %446 = vrot.lane.b32.xlu0 %v439_v47, %s845_s30 }
 0x14a   : > { %v437_v57 = vpop.permute.xlu1 %436  ;;  %v309_v59 = vpop.permute.xlu0 %308 }
 0x14b   : > { %v440_v61 = vsel %vm247_vm2, %v437_v57, %v1099_v38  ;;  %v314_v18 = vsel %vm247_vm2, %v309_v59, %v1093_v34 }
 0x14c   : > { %448 = vrot.lane.b32.xlu1 %v440_v61, %s845_s30  ;;  %284 = vrot.lane.b32.xlu0 %v263_v42, %s846_s2  ;;  %v244_v42 = vadd.f32 %v241_v29, %v238_v26 }
 0x14e   : > { %v311_v7 = vpop.permute.xlu1 %310  ;;  %v313_v63 = vpop.permute.xlu0 %312 }
 0x14f   : > { %v315_v38 = vsel %vm247_vm2, %v311_v7, %v1103_v43  ;;  %v316_v1 = vsel %vm247_vm2, %v313_v63, %v1112_v49  ;;  %v421_v63 = vadd.f32 %v418_v28, %v415_v56 }
 0x150   : > { %286 = vrot.lane.b32.xlu1 %v264_v46, %s846_s2  ;;  %288 = vrot.lane.b32.xlu0 %v265_v48, %s846_s2  ;;  %v414_v48 = vadd.f32 %v411_v41, %v408_v40 }
 0x152   : > { %v484_v30 = vpop.permute.xlu1 %483  ;;  %v486_v2 = vpop.permute.xlu0 %485  ;;  %v420_v52 = vadd.f32 %v417_v44, %v414_v48 }
 0x153   : > { %v489_v3 = vsel %vm247_vm2, %v484_v30, %v1117_v54  ;;  %v490_v5 = vsel %vm247_vm2, %v486_v2, %v1122_v58 }
 0x154   : > { %459 = vrot.lane.b32.xlu1 %v438_v55, %s846_s2  ;;  %461 = vrot.lane.b32.xlu0 %v439_v47, %s846_s2  ;;  %v245_v55 = vadd.f32 %v242_v32, %v239_v19  ;;  %v246_v47 = vadd.f32 %v243_v21, %v240_v27 }
 0x156   : > { %v488_v34 = vpop.permute.xlu1 %487 }
 0x157   : > { %v491_v6 = vsel %vm247_vm2, %v488_v34, %v1126_v60  ;;  %v175_v60 = vlaneseq }
 0x158   : > { %463 = vrot.lane.b32.xlu1 %v440_v61, %s846_s2  ;;  %320 = vrot.lane.b32.xlu0 %v314_v18, %s847_s5 }
 0x159   : > { %v1202_v25 = vand.u32 127, %v175_v60 }
 0x15b   : > { %vm177_vm3 = vcmp.ge.s32.totalorder %v1202_v25, 2  ;;  %vm180_vm4 = vcmp.lt.s32.totalorder %v1202_v25, 14  ;;  %vm178_vm5 = vcmp.ge.s32.totalorder %v1202_v25, 1  ;;  %vm179_vm6 = vcmp.lt.s32.totalorder %v1202_v25, 15 }
 0x15c   : > { %322 = vrot.lane.b32.xlu1 %v315_v38, %s847_s5  ;;  %324 = vrot.lane.b32.xlu0 %v316_v1, %s847_s5 }
 0x160   : > { %495 = vrot.lane.b32.xlu1 %v489_v3, %s847_s5  ;;  %497 = vrot.lane.b32.xlu0 %v490_v5, %s847_s5 }
 0x164   : > { %499 = vrot.lane.b32.xlu1 %v491_v6, %s847_s5  ;;  %335 = vrot.lane.b32.xlu0 %v314_v18, %s848_s12  ;;  %v416_v18 = vadd.f32 %v413_v62, %v410_v51 }
 0x166   : > { %v422_v60 = vadd.f32 %v419_v4, %v416_v18 }
 0x168   : > { %337 = vrot.lane.b32.xlu1 %v315_v38, %s848_s12  ;;  %339 = vrot.lane.b32.xlu0 %v316_v1, %s848_s12 }
 0x16c   : > { %510 = vrot.lane.b32.xlu1 %v489_v3, %s848_s12  ;;  %512 = vrot.lane.b32.xlu0 %v490_v5, %s848_s12 }
 0x170   : > { %514 = vrot.lane.b32.xlu1 %v491_v6, %s848_s12 }
 0x1ac   : > { %v270_v43 = vpop.permute.xlu0 %269 }
 0x1ad   : > { %v278_v50 = vsel %vm177_vm3, %v270_v43, 0.0 }
 0x1ae   : > { %v281_v53 = vadd.f32 %v278_v50, %v244_v42 }
 0x1b1   : > { %v274_v54 = vpop.permute.xlu0 %273 }
 0x1b2   : > { %v280_v11 = vsel %vm177_vm3, %v274_v54, 0.0 }
 0x1b3   : > { %v283_v2 = vadd.f32 %v280_v11, %v246_v47 }
 0x1b6   : > { %v272_v49 = vpop.permute.xlu1 %271 }
 0x1b7   : > { %v279_v39 = vsel %vm177_vm3, %v272_v49, 0.0 }
 0x1b8   : > { %v282_v1 = vadd.f32 %v279_v39, %v245_v55 }
 0x1ba   : > { %v445_v8 = vpop.permute.xlu1 %444  ;;  %v1192_v10 = vpop.permute.xlu0 %446 }
 0x1bb   : > { %v453_v3 = vsel %vm177_vm3, %v445_v8, 0.0  ;;  %v454_v0 = vsel %vm177_vm3, %v1192_v10, 0.0 }
 0x1bc   : > { %v457_v22 = vadd.f32 %v454_v0, %v421_v63 }
 0x1be   : > { %v1194_v58 = vpop.permute.xlu1 %448  ;;  %v285_v12 = vpop.permute.xlu0 %284 }
 0x1bf   : > { %v293_v17 = vsel %vm180_vm4, %v285_v12, 0.0  ;;  %v455_v26 = vsel %vm177_vm3, %v1194_v58, 0.0 }
 0x1c0   : > { %v296_v7 = vadd.f32 %v293_v17, %v281_v53  ;;  %v458_v9 = vadd.f32 %v455_v26, %v422_v60 }
 0x1c2   : > { %v287_v13 = vpop.permute.xlu1 %286  ;;  %v289_v16 = vpop.permute.xlu0 %288 }
 0x1c3   : > { %v294_v30 = vsel %vm180_vm4, %v287_v13, 0.0  ;;  %v295_v38 = vsel %vm180_vm4, %v289_v16, 0.0  ;;  %v456_v16 = vadd.f32 %v453_v3, %v420_v52 }
 0x1c4   : > { %v297_v12 = vadd.f32 %v294_v30, %v282_v1  ;;  %v298_v13 = vadd.f32 %v295_v38, %v283_v2 }
 0x1c6   : > { %v1198_v23 = vpop.permute.xlu1 %459  ;;  %v1200_v24 = vpop.permute.xlu0 %461 }
 0x1c7   : > { %v468_v20 = vsel %vm180_vm4, %v1198_v23, 0.0  ;;  %v469_v10 = vsel %vm180_vm4, %v1200_v24, 0.0 }
 0x1c8   : > { %v472_v40 = vadd.f32 %v469_v10, %v457_v22 }
 0x1ca   : > { %v1209_v14 = vpop.permute.xlu1 %463  ;;  %v321_v15 = vpop.permute.xlu0 %320 }
 0x1cb   : > { %v329_v59 = vsel %vm178_vm5, %v321_v15, 0.0  ;;  %v471_v15 = vadd.f32 %v468_v20, %v456_v16  ;;  %v470_v19 = vsel %vm180_vm4, %v1209_v14, 0.0 }
 0x1cc   : > { %v332_v5 = vadd.f32 %v329_v59, %v296_v7  ;;  %v473_v50 = vadd.f32 %v470_v19, %v458_v9 }
 0x1ce   : > { %v323_v45 = vpop.permute.xlu1 %322  ;;  %v325_v46 = vpop.permute.xlu0 %324 }
 0x1cf   : > { %v330_v43 = vsel %vm178_vm5, %v323_v45, 0.0  ;;  %v331_v49 = vsel %vm178_vm5, %v325_v46, 0.0 }
 0x1d0   : > { %v333_v29 = vadd.f32 %v330_v43, %v297_v12  ;;  %v334_v31 = vadd.f32 %v331_v49, %v298_v13 }
 0x1d2   : > { %v496_v57 = vpop.permute.xlu1 %495  ;;  %v498_v61 = vpop.permute.xlu0 %497 }
 0x1d3   : > { %v504_v23 = vsel %vm178_vm5, %v496_v57, 0.0  ;;  %v505_v36 = vsel %vm178_vm5, %v498_v61, 0.0 }
 0x1d4   : > { %v507_v37 = vadd.f32 %v504_v23, %v471_v15  ;;  %v508_v32 = vadd.f32 %v505_v36, %v472_v40 }
 0x1d6   : > { %v500_v34 = vpop.permute.xlu1 %499  ;;  %v336_v6 = vpop.permute.xlu0 %335 }
 0x1d7   : > { %v344_v54 = vsel %vm179_vm6, %v336_v6, 0.0  ;;  %v506_v45 = vsel %vm178_vm5, %v500_v34, 0.0 }
 0x1d8   : > { %v347_v8 = vadd.f32 %v344_v54, %v332_v5  ;;  %v509_v51 = vadd.f32 %v506_v45, %v473_v50 }
 0x1da   : > { %350 = vst.msk [vmem:[%s992_s25] sm:$0xff] %vm161_vm1, %v347_v8  ;;  %v338_v33 = vpop.permute.xlu1 %337  ;;  %v340_v35 = vpop.permute.xlu0 %339 }
 0x1db   : > { %v345_v24 = vsel %vm179_vm6, %v338_v33, 0.0  ;;  %v346_v58 = vsel %vm179_vm6, %v340_v35, 0.0 }
 0x1dc   : > { %v348_v41 = vadd.f32 %v345_v24, %v333_v29  ;;  %v349_v42 = vadd.f32 %v346_v58, %v334_v31 }
 0x1de   : > { %351 = vst.msk [vmem:[%s992_s25 + $0x10] sm:$0xff] %vm161_vm1, %v348_v41  ;;  %352 = vst.msk [vmem:[%s992_s25 + $0x20] sm:$0xff] %vm161_vm1, %v349_v42  ;;  %v511_v27 = vpop.permute.xlu1 %510  ;;  %v513_v21 = vpop.permute.xlu0 %512 }
 0x1df   : > { %v519_v46 = vsel %vm179_vm6, %v511_v27, 0.0  ;;  %v520_v14 = vsel %vm179_vm6, %v513_v21, 0.0 }
 0x1e0   : > { %v522_v48 = vadd.f32 %v519_v46, %v507_v37  ;;  %v523_v44 = vadd.f32 %v520_v14, %v508_v32 }
 0x1e2   : > { %525 = vst.msk [vmem:[%s992_s25 + $0x8] sm:$0xff] %vm161_vm1, %v522_v48  ;;  %526 = vst.msk [vmem:[%s992_s25 + $0x18] sm:$0xff] %vm161_vm1, %v523_v44  ;;  %v515_v56 = vpop.permute.xlu1 %514 }
 0x1e3   : > { %v521_v28 = vsel %vm179_vm6, %v515_v56, 0.0 }
 0x1e4   : > { %v524_v62 = vadd.f32 %v521_v28, %v509_v51 }
 0x1e6   : > { %527 = vst.msk [vmem:[%s992_s25 + $0x28] sm:$0xff] %vm161_vm1, %v524_v62 }
 0x1e7   : > { %769 = shalt.err (!%p766_p4)
}
 0x1e8   : > { %s770_s3 = scalar_lea.hbm %s1294_s22, 1536  ;;  %s774_s25 = scalar_lea.hbm %s1348_s1, 3072 }
 0x1e9   : > { %p771_p6 = scmp.ne.s32.totalorder %s1294_s22, %s770_s3  ;;  %p775_p12 = scmp.lt.u32.totalorder %s1294_s22, %s1348_s1 }
 0x1ea   : > { %p776_p1 = scmp.lt.u32.totalorder %s774_s25, %s770_s3  ;;  %p778_p8 = scmp.lt.u32.totalorder %s770_s3, %s1294_s22 }
 0x1eb   : > { %p772_p7 = pnand %p771_p6, %p1356_p9 }
 0x1ec   : > { %p777_p3 = por %p776_p1, %p775_p12 }
 0x1ed   : > { %p773_p10 = pneg %p772_p7 }
 0x1ee   : > { %p779_p11 = por %p778_p8, %p777_p3 }
 0x1f0   : > { %p780_p0 = pnand %p779_p11, %p773_p10 }
 0x1f2   : > { %783 = shalt.err (!%p780_p0)
}
 0x1f3   : > { %s850_s2 = smov 128   ;;  %s851_s5 = smov 8  }
 0x1f4   : > { %656 = dma.vmem_to_hbm [thread:$0]  (%p1356_p9), %s1296_s15, 1536, %s1294_s22, %s532_s9, %s850_s2, %s850_s2, %s851_s5  }
 0x1f5 PF: > { %s562_s12 = sand.u32 1, %s818_s6   ;;  %p1357_p5 = scmp.ne.s32.totalorder %s1353_s21, 0 }
 0x1f6   : > { %p1358_p13 = scmp.ge.s32.totalorder %s838_s11, 2  ;;  %s563_s13 = scalar_lea.sflag [#allocation5], %s562_s12 }
 0x1f8   : > { %p663_p2 = pnand %p1358_p13, %p1357_p5 }
 0x1fa   : > { %813 = dma.done.wait (!%p663_p2), %s563_s13, 1536  }
 0x1fb   : > { %815 = vsyncadd (!%p663_p2), %s563_s13, 4294965760  ;;  %s17_s11 = sadd.s32 1, %s838_s11   ;;  %s1359_s6 = smov %s822_s7 }
 0x1fc   : > { %p14_p4 = scmp.ge.s32.totalorder %s17_s11, 4   ;;  %s1360_s7 = smov %s826_s8 }
 0x1fd   : > { %s1361_s8 = smov %s918_s20  ;;  %s1362_s9 = smov %s834_s10 }
 0x1fe   : > { %s1363_s10 = smov %s1365_s14  ;;  %16 = sbr.rel (!%p14_p4) target bundleno = 6 (0x6), region = 70 }
 0x205   :  { %568 = vsyncpa [#allocation4], 1 }
 0x206   :  { %570 = vsyncpa [#allocation4 + $0x1], 1 }
 0x207   :  { %571 = vsyncpa [#allocation5], 1 }
 0x208   :  { %573 = vsyncpa [#allocation5 + $0x1], 1 }

</bundles_post_ra>
